<compile_context>
chip_gen: v6e
topology: v6e:2x2x1
jax: 0.10.0
libtpu: 0.0.40
codegen_flags: <defaults>
</compile_context>

<pallas_src>
import functools

import numpy as np

import jax
import jax.numpy as jnp
from jax.experimental import pallas as pl
from jax.experimental.pallas import tpu as pltpu


# --------------------------------------------------------------------------- #
# Kernel bodies
# --------------------------------------------------------------------------- #
def _highway2(x, w1_ref, b1_ref, w2_ref, b2_ref, cdt, hp):
    """Two highway layers; each layer's transform+gate is one [hp, 2hp] GEMM."""
    for w_ref, b_ref in ((w1_ref, b1_ref), (w2_ref, b2_ref)):
        tg = jnp.dot(x.astype(cdt), w_ref[...],
                     preferred_element_type=jnp.float32) + b_ref[...]
        t = jnp.maximum(tg[:, :hp], 0.0)      # transform (relu), f32 on VPU
        g = jax.nn.sigmoid(tg[:, hp:])        # gate, f32 (EUP slot)
        x = x + g * (t - x)                   # == g*t + (1-g)*x
    return x


def _chord_onehot_kernel(idx_ref, tbl_ref, w1_ref, b1_ref, w2_ref, b2_ref,
                         out_ref, *, sub_rows):
    """Fused one-hot MXU gather of (embed @ proj) + 2-layer highway."""
    hp = out_ref.shape[1]
    vp = tbl_ref.shape[0]
    cdt = tbl_ref.dtype
    tm = out_ref.shape[0]
    # Independent row sub-blocks let the scheduler hide one block's
    # relu/sigmoid/mix under another block's GEMMs.
    for s in range(tm // sub_rows):
        r0 = s * sub_rows
        idx = idx_ref[pl.ds(r0, sub_rows), :]                          # (sub,1)
        iota = jax.lax.broadcasted_iota(jnp.int32, (sub_rows, vp), 1)
        onehot = (idx == iota).astype(cdt)                             # (sub,vp)
        x = jnp.dot(onehot, tbl_ref[...],
                    preferred_element_type=jnp.float32)                # gather
        x = _highway2(x, w1_ref, b1_ref, w2_ref, b2_ref, cdt, hp)
        out_ref[pl.ds(r0, sub_rows), :] = x.astype(out_ref.dtype)


def _chord_gathered_kernel(x_ref, w1_ref, b1_ref, w2_ref, b2_ref, out_ref,
                           *, sub_rows):
    """Highway-only kernel; the embed+proj gather was done in the wrapper."""
    hp = out_ref.shape[1]
    cdt = w1_ref.dtype
    tm = out_ref.shape[0]
    for s in range(tm // sub_rows):
        r0 = s * sub_rows
        x = x_ref[pl.ds(r0, sub_rows), :].astype(jnp.float32)
        x = _highway2(x, w1_ref, b1_ref, w2_ref, b2_ref, cdt, hp)
        out_ref[pl.ds(r0, sub_rows), :] = x.astype(out_ref.dtype)


# --------------------------------------------------------------------------- #
# Wrapper helpers
# --------------------------------------------------------------------------- #
def _round_up(x, m):
    return (x + m - 1) // m * m


def _pad2(a, rows, cols):
    return jnp.pad(a, ((0, rows - a.shape[0]), (0, cols - a.shape[1])))


def _vmem_capacity_bytes():
    try:
        return int(pltpu.get_tpu_info().vmem_capacity_bytes)
    except Exception:
        return 64 * 1024 * 1024            # conservative (v7x per-core VMEM)


def _vmem_bytes(tm, vp, hp, wbytes, obytes, *, onehot, single_buf_weights):
    """Rough per-call VMEM footprint (pipeline buffers + in-kernel temps)."""
    wmul = 1 if single_buf_weights else 2            # grid-invariant operands
    io = 2 * tm * hp * obytes                        # output tile (dbl-buffered)
    io += 2 * tm * (1 * 4 if onehot else hp * 4)     # idx tile or gathered f32 x
    weights = wmul * (2 * hp * 2 * hp * wbytes + 2 * 2 * hp * 4)
    if onehot:
        weights += wmul * vp * hp * wbytes           # fused embed+proj table
    sub = min(tm, 256)                               # in-kernel sub-block temps
    temps = sub * 6 * hp * 4                         # x, tg(2hp), t, g, mix
    if onehot:
        temps += sub * vp * (4 + 4 + wbytes)         # iota + compare + one-hot
    return io + weights + temps


# --------------------------------------------------------------------------- #
# Wrapper
# --------------------------------------------------------------------------- #
def chord_embedding_forward(x_idx, params, *, tile_rows=None,
                            compute_dtype=jnp.bfloat16,
                            out_dtype=jnp.float32,
                            gather_in_wrapper=None):
    """x_idx: [B, S] integer indices.  Returns [B, S, H] in out_dtype.

    gather_in_wrapper: None = auto (one-hot MXU gather for small vocab,
    XLA gather of the proj-folded table for large vocab); True/False forces it.
    out_dtype can be set to bfloat16 to halve HBM writeback if downstream
    accepts it (default f32 to mirror the PyTorch module exactly).
    """
    embed_tbl = params["embed"]           # [V, E]  (row padding_idx is zero)
    wp = params["proj_w"]                 # [E, H]  (x @ W layout)
    V, E = embed_tbl.shape
    H = wp.shape[1]
    B, S = x_idx.shape
    N = B * S

    Hp = _round_up(H, 128)                # lane-dense hidden
    Vp = _round_up(V, 128)                # lane-dense one-hot contraction dim

    wbytes = np.dtype(compute_dtype).itemsize
    obytes = np.dtype(out_dtype).itemsize

    # --- Fold projection into the embedding table (exact linear composition) --
    fused_tbl = jnp.dot(embed_tbl, wp)                        # [V, H] f32

    def fuse_layer(wt, bt, wg, bg):
        w = jnp.concatenate([_pad2(wt, Hp, Hp), _pad2(wg, Hp, Hp)], axis=1)
        b = jnp.concatenate([_pad2(bt, 1, Hp), _pad2(bg, 1, Hp)], axis=1)
        return w.astype(compute_dtype), b.astype(jnp.float32)

    w1, b1 = fuse_layer(params["t1_w"], params["t1_b"],
                        params["g1_w"], params["g1_b"])
    w2, b2 = fuse_layer(params["t2_w"], params["t2_b"],
                        params["g2_w"], params["g2_b"])

    use_onehot = (Vp <= 2048) if gather_in_wrapper is None \
        else (not gather_in_wrapper)

    # --- Row-tile selection (generation-aware VMEM budget) ---------------------
    phys = _vmem_capacity_bytes()
    budget = (90 << 20) if phys >= (96 << 20) else (36 << 20)

    n_rows = _round_up(N, 8)
    default_tm = 1024 if phys >= (96 << 20) else 512
    tm = default_tm if tile_rows is None else max(8, _round_up(int(tile_rows), 8))
    tm = min(tm, n_rows)
    if tile_rows is None and n_rows >= 16:
        # >= 2 grid steps so the ("parallel",) axis feeds both v7x TensorCores.
        tm = min(tm, _round_up((n_rows + 1) // 2, 8))
    while tm > 8 and _vmem_bytes(tm, Vp, Hp, wbytes, obytes,
                                 onehot=use_onehot,
                                 single_buf_weights=True) > budget:
        tm = max(8, _round_up(tm // 2, 8))

    sub = 256 if tm % 256 == 0 else (128 if tm % 128 == 0 else tm)

    est = _vmem_bytes(tm, Vp, Hp, wbytes, obytes,
                      onehot=use_onehot, single_buf_weights=False)
    vmem_limit = int(min(int(phys * 0.75), max(32 << 20, int(1.5 * est))))

    Np = _round_up(N, tm)                 # no ragged last block
    grid = (Np // tm,)
    idx_flat = x_idx.reshape(-1).astype(jnp.int32)

    # --- Operands --------------------------------------------------------------
    if use_onehot:
        tbl_p = _pad2(fused_tbl, Vp, Hp).astype(compute_dtype)    # [Vp, Hp]
        idx = jnp.zeros((Np, 1), jnp.int32).at[:N, 0].set(idx_flat)
        operands = (idx, tbl_p, w1, b1, w2, b2)
    else:
        # Large vocab: XLA gathers the (proj-folded) table in HBM; the kernel
        # then only runs the highway layers on row tiles.
        fused_p = _pad2(fused_tbl, V, Hp)                         # f32, cols pad
        x0 = jnp.take(fused_p, idx_flat, axis=0)                  # [N, Hp] f32
        x0 = jnp.pad(x0, ((0, Np - N), (0, 0)))
        operands = (x0, w1, b1, w2, b2)

    # --- pallas_call builder ---------------------------------------------------
    def build(single_buffer_weights):
        if single_buffer_weights:
            const_spec = lambda r, c: pl.BlockSpec(
                (r, c), lambda i: (0, 0), pipeline_mode=pl.Buffered(1))
        else:
            const_spec = lambda r, c: pl.BlockSpec((r, c), lambda i: (0, 0))

        weight_specs = [
            const_spec(Hp, 2 * Hp), const_spec(1, 2 * Hp),   # highway 1 (W, b)
            const_spec(Hp, 2 * Hp), const_spec(1, 2 * Hp),   # highway 2 (W, b)
        ]
        if use_onehot:
            kernel = functools.partial(_chord_onehot_kernel, sub_rows=sub)
            in_specs = ([pl.BlockSpec((tm, 1), lambda i: (i, 0)),   # indices
                         const_spec(Vp, Hp)]                        # fused table
                        + weight_specs)
        else:
            kernel = functools.partial(_chord_gathered_kernel, sub_rows=sub)
            in_specs = ([pl.BlockSpec((tm, Hp), lambda i: (i, 0))]  # gathered x
                        + weight_specs)

        return pl.pallas_call(
            kernel,
            out_shape=jax.ShapeDtypeStruct((Np, Hp), out_dtype),
            grid_spec=pltpu.PrefetchScalarGridSpec(
                num_scalar_prefetch=0,
                grid=grid,
                in_specs=in_specs,
                out_specs=pl.BlockSpec((tm, Hp), lambda i: (i, 0)),
            ),
            compiler_params=pltpu.CompilerParams(
                dimension_semantics=("parallel",),
                vmem_limit_bytes=vmem_limit,
            ),
        )

    try:
        out = build(True)(*operands)
    except Exception:
        # TODO(synk): pl.Buffered(1) single-buffering of grid-invariant weights
        # is a VMEM-only optimization; fall back to default double-buffering if
        # this JAX build rejects buffer_count=1.
        out = build(False)(*operands)

    return out[:N, :H].reshape(B, S, H)


# --------------------------------------------------------------------------- #
# Params & reference
# --------------------------------------------------------------------------- #
def init_params(key, *, hidden_size, num_embeddings, embedding_size,
                padding_idx=0):
    keys = jax.random.split(key, 10)
    embed = jax.random.normal(keys[0], (num_embeddings, embedding_size),
                              jnp.float32)
    embed = embed.at[padding_idx].set(0.0)   # nn.Embedding padding_idx semantics

    def linear(kw, kb, fan_in, fan_out, bias=True):
        bound = 1.0 / jnp.sqrt(fan_in)
        w = jax.random.uniform(kw, (fan_in, fan_out), jnp.float32, -bound, bound)
        if not bias:
            return w, None
        b = jax.random.uniform(kb, (1, fan_out), jnp.float32, -bound, bound)
        return w, b

    proj_w, _ = linear(keys[1], keys[1], embedding_size, hidden_size, bias=False)
    t1_w, t1_b = linear(keys[2], keys[3], hidden_size, hidden_size)
    g1_w, g1_b = linear(keys[4], keys[5], hidden_size, hidden_size)
    t2_w, t2_b = linear(keys[6], keys[7], hidden_size, hidden_size)
    g2_w, g2_b = linear(keys[8], keys[9], hidden_size, hidden_size)

    return dict(embed=embed, proj_w=proj_w,
                t1_w=t1_w, t1_b=t1_b, g1_w=g1_w, g1_b=g1_b,
                t2_w=t2_w, t2_b=t2_b, g2_w=g2_w, g2_b=g2_b)


def reference_forward(x_idx, p, compute_dtype=jnp.float32):
    """Pure-JAX reference mirroring the PyTorch forward (eval mode).

    With compute_dtype=bfloat16 it mirrors the kernel's mixed precision
    (bf16 MXU inputs, f32 accumulation & elementwise, proj folded into table)."""
    cast = lambda a: a.astype(compute_dtype).astype(jnp.float32)
    fused = cast(jnp.dot(p["embed"], p["proj_w"]))         # embed @ proj folded
    x = jnp.take(fused, x_idx, axis=0)                     # [B, S, H]
    for wt, bt, wg, bg in [(p["t1_w"], p["t1_b"], p["g1_w"], p["g1_b"]),
                           (p["t2_w"], p["t2_b"], p["g2_w"], p["g2_b"])]:
        xb = cast(x)
        g = jax.nn.sigmoid(jnp.dot(xb, cast(wg)) + bg)
        t = jax.nn.relu(jnp.dot(xb, cast(wt)) + bt)
        x = g * t + (1.0 - g) * x
    return x


# --------------------------------------------------------------------------- #
# Smoke test
# --------------------------------------------------------------------------- #
if __name__ == "__main__":
    B, S = 2, 8
    hidden_size = 32
    embedding_size = 32
    num_embeddings = 64
    drop_prob = 0.1  # unused at inference (dropout is identity in eval mode)

    key = jax.random.PRNGKey(0)
    k_idx, k_params = jax.random.split(key)
    params = init_params(k_params, hidden_size=hidden_size,
                         num_embeddings=num_embeddings,
                         embedding_size=embedding_size)
    x_idx = jax.random.randint(k_idx, (B, S), 0, num_embeddings, dtype=jnp.int32)

    ref_f32 = reference_forward(x_idx, params)

    # f32 path (one-hot MXU gather): must match the fp32 reference.
    out_f32 = jax.block_until_ready(
        chord_embedding_forward(x_idx, params, compute_dtype=jnp.float32))
    assert out_f32.shape == (B, S, hidden_size), out_f32.shape
    assert jnp.allclose(out_f32, ref_f32, atol=2e-5, rtol=2e-5), \
        float(jnp.max(jnp.abs(out_f32 - ref_f32)))

    # Wrapper-gather path (used automatically for large vocabularies).
    out_g = jax.block_until_ready(
        chord_embedding_forward(x_idx, params, compute_dtype=jnp.float32,
                                gather_in_wrapper=True))
    assert out_g.shape == (B, S, hidden_size), out_g.shape
    assert jnp.allclose(out_g, ref_f32, atol=2e-5, rtol=2e-5), \
        float(jnp.max(jnp.abs(out_g - ref_f32)))

    # bf16 fast path (default): matches a bf16-mirroring reference tightly and
    # the fp32 reference loosely.
    out_bf16 = jax.block_until_ready(chord_embedding_forward(x_idx, params))
    ref_bf16 = reference_forward(x_idx, params, compute_dtype=jnp.bfloat16)
    assert out_bf16.shape == (B, S, hidden_size), out_bf16.shape
    assert jnp.allclose(out_bf16, ref_bf16, atol=2e-3, rtol=2e-3), \
        float(jnp.max(jnp.abs(out_bf16 - ref_bf16)))
    assert float(jnp.max(jnp.abs(out_bf16 - ref_f32))) < 0.1

    print("KERNEL_OK")
</pallas_src>

<mosaic_0001>
module attributes {stable_mosaic.version = 11 : i64} {
  func.func @_chord_onehot_kernel(%arg0: i32, %arg1: memref<8x1xi32, #tpu.memory_space<vmem>>, %arg2: memref<128x128xf32, #tpu.memory_space<vmem>>, %arg3: memref<128x256xf32, #tpu.memory_space<vmem>>, %arg4: memref<1x256xf32, #tpu.memory_space<vmem>>, %arg5: memref<128x256xf32, #tpu.memory_space<vmem>>, %arg6: memref<1x256xf32, #tpu.memory_space<vmem>>, %arg7: memref<8x128xf32, #tpu.memory_space<vmem>>) attributes {dimension_semantics = [#tpu.dimension_semantics<parallel>], iteration_bounds = array<i64: 2>, scalar_prefetch = 0 : i64, scratch_operands = 0 : i64, tpu.core_type = #tpu.core_type<tc>, window_params = [{transform_indices = @transform_0, window_bounds = array<i64: 8, 1>}, {pipeline_mode = #tpu.pipeline_mode<synchronous>, transform_indices = @transform_1, window_bounds = array<i64: 128, 128>}, {pipeline_mode = #tpu.pipeline_mode<synchronous>, transform_indices = @transform_2, window_bounds = array<i64: 128, 256>}, {pipeline_mode = #tpu.pipeline_mode<synchronous>, transform_indices = @transform_3, window_bounds = array<i64: 1, 256>}, {pipeline_mode = #tpu.pipeline_mode<synchronous>, transform_indices = @transform_4, window_bounds = array<i64: 128, 256>}, {pipeline_mode = #tpu.pipeline_mode<synchronous>, transform_indices = @transform_5, window_bounds = array<i64: 1, 256>}, {transform_indices = @transform_6, window_bounds = array<i64: 8, 128>}]} {
    %c0 = arith.constant 0 : index
    %c0_0 = arith.constant 0 : index
    %0 = vector.load %arg1[%c0, %c0_0] : memref<8x1xi32, #tpu.memory_space<vmem>>, vector<8x1xi32>
    %1 = tpu.iota {dimensions = array<i32: 1>} : vector<8x128xi32>
    %2 = vector.broadcast %0 : vector<8x1xi32> to vector<8x128xi32>
    %3 = arith.cmpi eq, %2, %1 : vector<8x128xi32>
    %4 = arith.extui %3 : vector<8x128xi1> to vector<8x128xi32>
    %5 = arith.sitofp %4 : vector<8x128xi32> to vector<8x128xf32>
    %c0_1 = arith.constant 0 : index
    %c0_2 = arith.constant 0 : index
    %6 = vector.load %arg2[%c0_1, %c0_2] : memref<128x128xf32, #tpu.memory_space<vmem>>, vector<128x128xf32>
    %cst = arith.constant dense<0.000000e+00> : vector<8x128xf32>
    %7 = tpu.matmul %5, %6, %cst {dimension_numbers = #tpu.dot_dimension_numbers<[1], [0], [0], [1], [0, 0, 1, 1], [], []>} : vector<8x128xf32>, vector<128x128xf32>, vector<8x128xf32> -> vector<8x128xf32>
    %c0_3 = arith.constant 0 : index
    %c0_4 = arith.constant 0 : index
    %8 = vector.load %arg3[%c0_3, %c0_4] : memref<128x256xf32, #tpu.memory_space<vmem>>, vector<128x256xf32>
    %cst_5 = arith.constant dense<0.000000e+00> : vector<8x256xf32>
    %9 = tpu.matmul %7, %8, %cst_5 {dimension_numbers = #tpu.dot_dimension_numbers<[1], [0], [0], [1], [0, 0, 1, 1], [], []>} : vector<8x128xf32>, vector<128x256xf32>, vector<8x256xf32> -> vector<8x256xf32>
    %c0_6 = arith.constant 0 : index
    %c0_7 = arith.constant 0 : index
    %10 = vector.load %arg4[%c0_6, %c0_7] : memref<1x256xf32, #tpu.memory_space<vmem>>, vector<1x256xf32>
    %11 = vector.broadcast %10 : vector<1x256xf32> to vector<8x256xf32>
    %12 = arith.addf %9, %11 : vector<8x256xf32>
    %13 = vector.extract_strided_slice %12 {offsets = [0, 0], sizes = [8, 128], strides = [1, 1]} : vector<8x256xf32> to vector<8x128xf32>
    %cst_8 = arith.constant 0.000000e+00 : f32
    %14 = vector.broadcast %cst_8 : f32 to vector<8x128xf32>
    %15 = arith.maximumf %13, %14 : vector<8x128xf32>
    %16 = vector.extract_strided_slice %12 {offsets = [0, 128], sizes = [8, 128], strides = [1, 1]} : vector<8x256xf32> to vector<8x128xf32>
    %17 = arith.negf %16 : vector<8x128xf32>
    %18 = math.exp %17 : vector<8x128xf32>
    %cst_9 = arith.constant 1.000000e+00 : f32
    %19 = vector.broadcast %cst_9 : f32 to vector<8x128xf32>
    %20 = arith.addf %19, %18 : vector<8x128xf32>
    %21 = arith.divf %19, %20 : vector<8x128xf32>
    %22 = arith.subf %15, %7 : vector<8x128xf32>
    %23 = arith.mulf %21, %22 : vector<8x128xf32>
    %24 = arith.addf %7, %23 : vector<8x128xf32>
    %c0_10 = arith.constant 0 : index
    %c0_11 = arith.constant 0 : index
    %25 = vector.load %arg5[%c0_10, %c0_11] : memref<128x256xf32, #tpu.memory_space<vmem>>, vector<128x256xf32>
    %cst_12 = arith.constant dense<0.000000e+00> : vector<8x256xf32>
    %26 = tpu.matmul %24, %25, %cst_12 {dimension_numbers = #tpu.dot_dimension_numbers<[1], [0], [0], [1], [0, 0, 1, 1], [], []>} : vector<8x128xf32>, vector<128x256xf32>, vector<8x256xf32> -> vector<8x256xf32>
    %c0_13 = arith.constant 0 : index
    %c0_14 = arith.constant 0 : index
    %27 = vector.load %arg6[%c0_13, %c0_14] : memref<1x256xf32, #tpu.memory_space<vmem>>, vector<1x256xf32>
    %28 = vector.broadcast %27 : vector<1x256xf32> to vector<8x256xf32>
    %29 = arith.addf %26, %28 : vector<8x256xf32>
    %30 = vector.extract_strided_slice %29 {offsets = [0, 0], sizes = [8, 128], strides = [1, 1]} : vector<8x256xf32> to vector<8x128xf32>
    %cst_15 = arith.constant 0.000000e+00 : f32
    %31 = vector.broadcast %cst_15 : f32 to vector<8x128xf32>
    %32 = arith.maximumf %30, %31 : vector<8x128xf32>
    %33 = vector.extract_strided_slice %29 {offsets = [0, 128], sizes = [8, 128], strides = [1, 1]} : vector<8x256xf32> to vector<8x128xf32>
    %34 = arith.negf %33 : vector<8x128xf32>
    %35 = math.exp %34 : vector<8x128xf32>
    %cst_16 = arith.constant 1.000000e+00 : f32
    %36 = vector.broadcast %cst_16 : f32 to vector<8x128xf32>
    %37 = arith.addf %36, %35 : vector<8x128xf32>
    %38 = arith.divf %36, %37 : vector<8x128xf32>
    %39 = arith.subf %32, %24 : vector<8x128xf32>
    %40 = arith.mulf %38, %39 : vector<8x128xf32>
    %41 = arith.addf %24, %40 : vector<8x128xf32>
    %c0_17 = arith.constant 0 : index
    %c0_18 = arith.constant 0 : index
    %42 = vector.load %arg7[%c0_17, %c0_18] : memref<8x128xf32, #tpu.memory_space<vmem>>, vector<8x128xf32>
    tpu.vector_store %arg7[%c0_17, %c0_18], %41 {strides = array<i32>} : memref<8x128xf32, #tpu.memory_space<vmem>>, vector<8x128xf32>,
    return
  }
  func.func @transform_0(%arg0: i32) -> (i32, i32) {
    %c0_i32 = arith.constant 0 : i32
    %c0_i32_0 = arith.constant 0 : i32
    return %arg0, %c0_i32 : i32, i32
  }
  func.func @transform_1(%arg0: i32) -> (i32, i32) {
    %c0_i32 = arith.constant 0 : i32
    %c0_i32_0 = arith.constant 0 : i32
    %c0_i32_1 = arith.constant 0 : i32
    return %c0_i32, %c0_i32_0 : i32, i32
  }
  func.func @transform_2(%arg0: i32) -> (i32, i32) {
    %c0_i32 = arith.constant 0 : i32
    %c0_i32_0 = arith.constant 0 : i32
    %c0_i32_1 = arith.constant 0 : i32
    return %c0_i32, %c0_i32_0 : i32, i32
  }
  func.func @transform_3(%arg0: i32) -> (i32, i32) {
    %c0_i32 = arith.constant 0 : i32
    %c0_i32_0 = arith.constant 0 : i32
    %c0_i32_1 = arith.constant 0 : i32
    return %c0_i32, %c0_i32_0 : i32, i32
  }
  func.func @transform_4(%arg0: i32) -> (i32, i32) {
    %c0_i32 = arith.constant 0 : i32
    %c0_i32_0 = arith.constant 0 : i32
    %c0_i32_1 = arith.constant 0 : i32
    return %c0_i32, %c0_i32_0 : i32, i32
  }
  func.func @transform_5(%arg0: i32) -> (i32, i32) {
    %c0_i32 = arith.constant 0 : i32
    %c0_i32_0 = arith.constant 0 : i32
    %c0_i32_1 = arith.constant 0 : i32
    return %c0_i32, %c0_i32_0 : i32, i32
  }
  func.func @transform_6(%arg0: i32) -> (i32, i32) {
    %c0_i32 = arith.constant 0 : i32
    %c0_i32_0 = arith.constant 0 : i32
    return %arg0, %c0_i32 : i32, i32
  }
}

module attributes {stable_mosaic.version = 11 : i64} {
  func.func @_chord_onehot_kernel(%arg0: i32, %arg1: memref<8x1xi32, #tpu.memory_space<vmem>>, %arg2: memref<128x128xf32, #tpu.memory_space<vmem>>, %arg3: memref<128x256xf32, #tpu.memory_space<vmem>>, %arg4: memref<1x256xf32, #tpu.memory_space<vmem>>, %arg5: memref<128x256xf32, #tpu.memory_space<vmem>>, %arg6: memref<1x256xf32, #tpu.memory_space<vmem>>, %arg7: memref<8x128xf32, #tpu.memory_space<vmem>>) attributes {dimension_semantics = [#tpu.dimension_semantics<parallel>], iteration_bounds = array<i64: 2>, scalar_prefetch = 0 : i64, scratch_operands = 0 : i64, tpu.core_type = #tpu.core_type<tc>, window_params = [{transform_indices = @transform_0, window_bounds = array<i64: 8, 1>}, {pipeline_mode = #tpu.pipeline_mode<synchronous>, transform_indices = @transform_1, window_bounds = array<i64: 128, 128>}, {pipeline_mode = #tpu.pipeline_mode<synchronous>, transform_indices = @transform_2, window_bounds = array<i64: 128, 256>}, {pipeline_mode = #tpu.pipeline_mode<synchronous>, transform_indices = @transform_3, window_bounds = array<i64: 1, 256>}, {pipeline_mode = #tpu.pipeline_mode<synchronous>, transform_indices = @transform_4, window_bounds = array<i64: 128, 256>}, {pipeline_mode = #tpu.pipeline_mode<synchronous>, transform_indices = @transform_5, window_bounds = array<i64: 1, 256>}, {transform_indices = @transform_6, window_bounds = array<i64: 8, 128>}]} {
    %c0 = arith.constant 0 : index
    %c0_0 = arith.constant 0 : index
    %0 = vector.load %arg1[%c0, %c0_0] : memref<8x1xi32, #tpu.memory_space<vmem>>, vector<8x1xi32>
    %1 = tpu.iota {dimensions = array<i32: 1>} : vector<8x128xi32>
    %2 = vector.broadcast %0 : vector<8x1xi32> to vector<8x128xi32>
    %3 = arith.cmpi eq, %2, %1 : vector<8x128xi32>
    %4 = arith.extui %3 : vector<8x128xi1> to vector<8x128xi32>
    %5 = arith.sitofp %4 : vector<8x128xi32> to vector<8x128xf32>
    %c0_1 = arith.constant 0 : index
    %c0_2 = arith.constant 0 : index
    %6 = vector.load %arg2[%c0_1, %c0_2] : memref<128x128xf32, #tpu.memory_space<vmem>>, vector<128x128xf32>
    %cst = arith.constant dense<0.000000e+00> : vector<8x128xf32>
    %7 = tpu.matmul %5, %6, %cst {dimension_numbers = #tpu.dot_dimension_numbers<[1], [0], [0], [1], [0, 0, 1, 1], [], []>} : vector<8x128xf32>, vector<128x128xf32>, vector<8x128xf32> -> vector<8x128xf32>
    %c0_3 = arith.constant 0 : index
    %c0_4 = arith.constant 0 : index
    %8 = vector.load %arg3[%c0_3, %c0_4] : memref<128x256xf32, #tpu.memory_space<vmem>>, vector<128x256xf32>
    %cst_5 = arith.constant dense<0.000000e+00> : vector<8x256xf32>
    %9 = tpu.matmul %7, %8, %cst_5 {dimension_numbers = #tpu.dot_dimension_numbers<[1], [0], [0], [1], [0, 0, 1, 1], [], []>} : vector<8x128xf32>, vector<128x256xf32>, vector<8x256xf32> -> vector<8x256xf32>
    %c0_6 = arith.constant 0 : index
    %c0_7 = arith.constant 0 : index
    %10 = vector.load %arg4[%c0_6, %c0_7] : memref<1x256xf32, #tpu.memory_space<vmem>>, vector<1x256xf32>
    %11 = vector.broadcast %10 : vector<1x256xf32> to vector<8x256xf32>
    %12 = arith.addf %9, %11 : vector<8x256xf32>
    %13 = vector.extract_strided_slice %12 {offsets = [0, 0], sizes = [8, 128], strides = [1, 1]} : vector<8x256xf32> to vector<8x128xf32>
    %cst_8 = arith.constant 0.000000e+00 : f32
    %14 = vector.broadcast %cst_8 : f32 to vector<8x128xf32>
    %15 = arith.maximumf %13, %14 : vector<8x128xf32>
    %16 = vector.extract_strided_slice %12 {offsets = [0, 128], sizes = [8, 128], strides = [1, 1]} : vector<8x256xf32> to vector<8x128xf32>
    %17 = arith.negf %16 : vector<8x128xf32>
    %18 = math.exp %17 : vector<8x128xf32>
    %cst_9 = arith.constant 1.000000e+00 : f32
    %19 = vector.broadcast %cst_9 : f32 to vector<8x128xf32>
    %20 = arith.addf %19, %18 : vector<8x128xf32>
    %21 = arith.divf %19, %20 : vector<8x128xf32>
    %22 = arith.subf %15, %7 : vector<8x128xf32>
    %23 = arith.mulf %21, %22 : vector<8x128xf32>
    %24 = arith.addf %7, %23 : vector<8x128xf32>
    %c0_10 = arith.constant 0 : index
    %c0_11 = arith.constant 0 : index
    %25 = vector.load %arg5[%c0_10, %c0_11] : memref<128x256xf32, #tpu.memory_space<vmem>>, vector<128x256xf32>
    %cst_12 = arith.constant dense<0.000000e+00> : vector<8x256xf32>
    %26 = tpu.matmul %24, %25, %cst_12 {dimension_numbers = #tpu.dot_dimension_numbers<[1], [0], [0], [1], [0, 0, 1, 1], [], []>} : vector<8x128xf32>, vector<128x256xf32>, vector<8x256xf32> -> vector<8x256xf32>
    %c0_13 = arith.constant 0 : index
    %c0_14 = arith.constant 0 : index
    %27 = vector.load %arg6[%c0_13, %c0_14] : memref<1x256xf32, #tpu.memory_space<vmem>>, vector<1x256xf32>
    %28 = vector.broadcast %27 : vector<1x256xf32> to vector<8x256xf32>
    %29 = arith.addf %26, %28 : vector<8x256xf32>
    %30 = vector.extract_strided_slice %29 {offsets = [0, 0], sizes = [8, 128], strides = [1, 1]} : vector<8x256xf32> to vector<8x128xf32>
    %cst_15 = arith.constant 0.000000e+00 : f32
    %31 = vector.broadcast %cst_15 : f32 to vector<8x128xf32>
    %32 = arith.maximumf %30, %31 : vector<8x128xf32>
    %33 = vector.extract_strided_slice %29 {offsets = [0, 128], sizes = [8, 128], strides = [1, 1]} : vector<8x256xf32> to vector<8x128xf32>
    %34 = arith.negf %33 : vector<8x128xf32>
    %35 = math.exp %34 : vector<8x128xf32>
    %cst_16 = arith.constant 1.000000e+00 : f32
    %36 = vector.broadcast %cst_16 : f32 to vector<8x128xf32>
    %37 = arith.addf %36, %35 : vector<8x128xf32>
    %38 = arith.divf %36, %37 : vector<8x128xf32>
    %39 = arith.subf %32, %24 : vector<8x128xf32>
    %40 = arith.mulf %38, %39 : vector<8x128xf32>
    %41 = arith.addf %24, %40 : vector<8x128xf32>
    %c0_17 = arith.constant 0 : index
    %c0_18 = arith.constant 0 : index
    %42 = vector.load %arg7[%c0_17, %c0_18] : memref<8x128xf32, #tpu.memory_space<vmem>>, vector<8x128xf32>
    tpu.vector_store %arg7[%c0_17, %c0_18], %41 {strides = array<i32>} : memref<8x128xf32, #tpu.memory_space<vmem>>, vector<8x128xf32>,
    return
  }
  func.func @transform_0(%arg0: i32) -> (i32, i32) {
    %c0_i32 = arith.constant 0 : i32
    %c0_i32_0 = arith.constant 0 : i32
    return %arg0, %c0_i32 : i32, i32
  }
  func.func @transform_1(%arg0: i32) -> (i32, i32) {
    %c0_i32 = arith.constant 0 : i32
    %c0_i32_0 = arith.constant 0 : i32
    %c0_i32_1 = arith.constant 0 : i32
    return %c0_i32, %c0_i32_0 : i32, i32
  }
  func.func @transform_2(%arg0: i32) -> (i32, i32) {
    %c0_i32 = arith.constant 0 : i32
    %c0_i32_0 = arith.constant 0 : i32
    %c0_i32_1 = arith.constant 0 : i32
    return %c0_i32, %c0_i32_0 : i32, i32
  }
  func.func @transform_3(%arg0: i32) -> (i32, i32) {
    %c0_i32 = arith.constant 0 : i32
    %c0_i32_0 = arith.constant 0 : i32
    %c0_i32_1 = arith.constant 0 : i32
    return %c0_i32, %c0_i32_0 : i32, i32
  }
  func.func @transform_4(%arg0: i32) -> (i32, i32) {
    %c0_i32 = arith.constant 0 : i32
    %c0_i32_0 = arith.constant 0 : i32
    %c0_i32_1 = arith.constant 0 : i32
    return %c0_i32, %c0_i32_0 : i32, i32
  }
  func.func @transform_5(%arg0: i32) -> (i32, i32) {
    %c0_i32 = arith.constant 0 : i32
    %c0_i32_0 = arith.constant 0 : i32
    %c0_i32_1 = arith.constant 0 : i32
    return %c0_i32, %c0_i32_0 : i32, i32
  }
  func.func @transform_6(%arg0: i32) -> (i32, i32) {
    %c0_i32 = arith.constant 0 : i32
    %c0_i32_0 = arith.constant 0 : i32
    return %arg0, %c0_i32 : i32, i32
  }
}

</mosaic_0001>

<bundles_post_ra>
// kernel: tpu_custom_call.1
= control target key start
LH: loop header
LB: loop body
LE: loop exit
PB: predicated region body
PF: predicated region fallthrough
CT: control target
= control target key end

     0   :  { %11 = vsyncpa [#allocation3], 0  ;;  %s1269_s0 = inlined_call_operand.vmem [shape: s32[16,1], index: 0, kind: input, shape index: {}]   ;;  %s1270_s1 = inlined_call_operand.hbm [shape: f32[128,128], index: 1, kind: input, shape index: {}]   ;;  %s1271_s2 = inlined_call_operand.hbm [shape: f32[128,256], index: 2, kind: input, shape index: {}]   ;;  %s1272_s3 = inlined_call_operand.vmem [shape: f32[1,256], index: 3, kind: input, shape index: {}]   ;;  %s1273_s4 = inlined_call_operand.hbm [shape: f32[128,256], index: 4, kind: input, shape index: {}]   ;;  %s1274_s5 = inlined_call_operand.vmem [shape: f32[1,256], index: 5, kind: input, shape index: {}]   ;;  %s1275_s6 = inlined_call_operand.hbm [shape: f32[16,128], index: 6, kind: output, shape index: {}]  }
   0x1   :  { %12 = vsyncpa [#allocation6], 0 }
   0x2   :  { %13 = vsyncpa [#allocation4], 0 }
   0x3   :  { %15 = vsyncpa [#allocation4 + $0x1], 0  ;;  %s1095_s21 = smov 0   ;;  %s1097_s22 = smov 0  }
   0x4   :  { %s1099_s23 = smov 0   ;;  %s1101_s24 = smov 0  }
   0x5 LB: > { %s1116_s25 = sadd.s32 4294967295, %s1046_s24   ;;  %s741_s26 = sadd.s32 4294967294, %s1046_s24   ;;  %s1046_s24 = sphi %s1101_s24, %s1283_s24   ;;  %s1042_s23 = sphi %s1099_s23, %s1282_s23   ;;  %s1038_s22 = sphi %s1097_s22, %s1281_s22   ;;  %s1034_s21 = sphi %s1095_s21, %s1280_s21  }
   0x6   : > { %s1120_s27 = sadd.s32 1, %s1046_s24   ;;  %s159_s28 = sadd.s32 1, %s1042_s23 }
   0x7   : > { %s156_s29 = ssub.s32 %s1046_s24, %s1120_s27  ;;  %p169_p0 = scmp.ne.s32.totalorder %s1042_s23, %s1038_s22 }
   0x8   : > { %p157_p1 = scmp.eq.s32.totalorder %s156_s29, 0  ;;  %p170_p2 = scmp.eq.s32.totalorder %s1116_s25, 1 }
   0x9   : > { %p175_p3 = scmp.ne.s32.totalorder %s1038_s22, %s1034_s21  ;;  %p176_p4 = scmp.eq.s32.totalorder %s741_s26, 1 }
   0xa   : > { %s1131_s30 = scalar_select %p157_p1, %s1042_s23, %s159_s28  }
   0xb   : > { %p1133_p5 = por %p170_p2, %p169_p0  ;;  %p1137_p6 = por %p176_p4, %p175_p3 }
   0xc   : > { %p742_p7 = scmp.ge.s32.totalorder %s1046_s24, 1  ;;  %p183_p8 = scmp.lt.s32.totalorder %s1046_s24, 3 }
   0xd   : > { %p841_p9 = scmp.eq.s32.totalorder %s1116_s25, 0  ;;  %s1048_s10 = smov [#allocation5]  }
   0xe   : > { %p1144_p10 = pnand %p742_p7, %p183_p8  ;;  %s208_s11 = sshll.u32 %s1048_s10, 4  ;;  %s209_s11 = int_to_ptr.vmem [resolvable:$true] %s208_s11 }
   0xf   : > { %s1049_s13 = smov [#allocation2]   ;;  %s911_s15 = scalar_lea.vmem %s209_s11, 4096 }
  0x10   : > { %p827_p11 = pneg %p1144_p10  ;;  %s195_s14 = sshll.u32 %s1049_s13, 4  ;;  %s196_s14 = int_to_ptr.vmem [resolvable:$true] %s195_s14 }
  0x11   : > { %p912_p0 = scmp.ne.s32.totalorder %s209_s11, %s911_s15  ;;  %p919_p3 = scmp.lt.s32.totalorder %s209_s11, %s209_s11 }
  0x12   : > { %p1152_p12 = pnand %p841_p9, %p827_p11  ;;  %p920_p4 = scmp.lt.s32.totalorder %s911_s15, %s911_s15 }
  0x14   : > { %p902_p13 = pneg %p1152_p12  ;;  %p921_p7 = por %p920_p4, %p919_p3 }
  0x16   : > { %p914_p1 = pnand %p912_p0, %p902_p13 }
  0x18   : > { %p915_p2 = pneg %p914_p1 }
  0x1a   : > { %p922_p8 = pnand %p921_p7, %p915_p2 }
  0x1c   : > { %925 = shalt.err (!%p922_p8)
}
  0x1d   : > { %s1050_s16 = smov 256   ;;  %s1051_s17 = smov 16  }
  0x1e   : > { %833 = dma.hbm_to_vmem [thread:$0]  (!%p1152_p12), %s1271_s2, 4096, %s209_s11, [#allocation6], %s1050_s16, %s1050_s16, %s1051_s17  }
  0x1f   : > { %s937_s20 = scalar_lea.vmem %s196_s14, 2048  ;;  %p945_p2 = scmp.lt.s32.totalorder %s196_s14, %s196_s14 }
  0x20   : > { %p938_p11 = scmp.ne.s32.totalorder %s196_s14, %s937_s20  ;;  %p946_p3 = scmp.lt.s32.totalorder %s937_s20, %s937_s20 }
  0x22   : > { %p940_p0 = pnand %p938_p11, %p902_p13  ;;  %p947_p4 = por %p946_p3, %p945_p2 }
  0x24   : > { %p941_p1 = pneg %p940_p0 }
  0x26   : > { %p948_p7 = pnand %p947_p4, %p941_p1 }
  0x28   : > { %951 = shalt.err (!%p948_p7)
}
  0x29   : > { %s1052_s26 = smov 128   ;;  %s1053_s28 = smov 8  }
  0x2a   : > { %830 = dma.hbm_to_vmem [thread:$0]  (!%p1152_p12), %s1270_s1, 2048, %s196_s14, [#allocation3], %s1052_s26, %s1052_s26, %s1053_s28  }
  0x2b   : > { %s1054_s11 = smov [#allocation7]  }
  0x2c   : > { %s224_s13 = sshll.u32 %s1054_s11, 4  ;;  %s225_s13 = int_to_ptr.vmem [resolvable:$true] %s224_s13 }
  0x2d   : > { %s963_s15 = scalar_lea.vmem %s225_s13, 4096  ;;  %p971_p1 = scmp.lt.s32.totalorder %s225_s13, %s225_s13 }
  0x2e   : > { %p964_p8 = scmp.ne.s32.totalorder %s225_s13, %s963_s15  ;;  %p972_p2 = scmp.lt.s32.totalorder %s963_s15, %s963_s15 }
  0x30   : > { %p966_p11 = pnand %p964_p8, %p902_p13  ;;  %p973_p3 = por %p972_p2, %p971_p1 }
  0x32   : > { %p967_p0 = pneg %p966_p11 }
  0x34   : > { %p974_p4 = pnand %p973_p3, %p967_p0 }
  0x36   : > { %977 = shalt.err (!%p974_p4)
}
  0x37   : > { %836 = dma.hbm_to_vmem [thread:$0]  (!%p1152_p12), %s1273_s4, 4096, %s225_s13, [#allocation6], %s1050_s16, %s1050_s16, %s1051_s17  }
  0x38   : > { %250 = sbr.rel (%p1144_p10) target bundleno = 868 (0x364), region = 44 }
  0x3d   : > { %1021 = dma.done.wait (%p841_p9), [#allocation3], 2048  }
  0x3e   : > { %1023 = vsyncadd (%p841_p9), [#allocation3], 4294965248 }
  0x3f   : > { %1025 = dma.done.wait (%p841_p9), [#allocation6], 8192  }
  0x40   : > { %1027 = vsyncadd (%p841_p9), [#allocation6], 4294959104  ;;  %p287_p13 = scmp.lt.s32.totalorder %s1116_s25, 1  ;;  %v1055_v0 = vmov 0   ;;  %v1056_v1 = vmov 0.0   ;;  %vm1057_vm0 = vmmov 0   ;;  %v292_v50 = vlaneseq }
  0x41   : > { %891 = vset.pattern.permute.xlu0 %v1055_v0  ;;  %778 = vmatprep.subr.mxu0 %v1056_v1  ;;  %v315_v3 = vld [vmem:[#allocation2 + $0x78] sm:$0xff]  ;;  %v314_v4 = vld [vmem:[#allocation2 + $0x70] sm:$0xff]  ;;  %v313_v5 = vld [vmem:[#allocation2 + $0x68] sm:$0xff]  ;;  %v1058_v53 = vmov 1.0   ;;  %s284_s10 = sand.u32 1, %s1038_s22   ;;  %s758_s13 = sshll.u32 %s1116_s25, 7 }
  0x42   : > { %s288_s9 = scalar_select %p287_p13, %s1116_s25, 1  ;;  %494 = vmatprep.mubr.f32.mxu1 %v1056_v1  ;;  %810 = vmatprep.mubr.msk.f32.mxu0 %vm1057_vm0, %v1056_v1  ;;  %v312_v6 = vld [vmem:[#allocation2 + $0x60] sm:$0xff]  ;;  %v311_v7 = vld [vmem:[#allocation2 + $0x58] sm:$0xff]  ;;  %v416_v9 = vld [vmem:[#allocation5 + $0xf0] sm:$0xff]  ;;  %v293_v51 = vand.u32 127, %v292_v50 }
  0x43   : > { %779 = vmatpush3.msra.mxu0 %v315_v3  ;;  %v417_v8 = vld [vmem:[#allocation5 + $0xf8] sm:$0xff]  ;;  %v415_v10 = vld [vmem:[#allocation5 + $0xe8] sm:$0xff]  ;;  %v414_v11 = vld [vmem:[#allocation5 + $0xe0] sm:$0xff]  ;;  %s751_s11 = sshll.u32 %s284_s10, 3  ;;  %s638_s16 = scalar_lea.sflag [#allocation4], %s284_s10 }
  0x44   : > { %s752_s12 = sshll.u32 %s288_s9, 3  ;;  %780 = vmatprep.subr.mxu0 %v1056_v1  ;;  %430 = vmatprep.subr.mxu1 %v417_v8  ;;  %v413_v12 = vld [vmem:[#allocation5 + $0xd8] sm:$0xff]  ;;  %v310_v13 = vld [vmem:[#allocation2 + $0x50] sm:$0xff]  ;;  %v411_v15 = vld [vmem:[#allocation5 + $0xc8] sm:$0xff]  ;;  %s286_s15 = scalar_lea.vmem [#allocation8], %s751_s11 }
  0x45   : > { %s290_s19 = scalar_lea.vmem %s1269_s0, %s752_s12  ;;  %781 = vmatpush3.msra.mxu0 %v314_v4  ;;  %431 = vmatpush1.msra.mxu1 %v416_v9  ;;  %v412_v14 = vld [vmem:[#allocation5 + $0xd0] sm:$0xff]  ;;  %v309_v16 = vld [vmem:[#allocation2 + $0x48] sm:$0xff]  ;;  %v410_v17 = vld [vmem:[#allocation5 + $0xc0] sm:$0xff]  ;;  %s651_s14 = sshll.u32 %s286_s15, 4  ;;  %s652_s14 = int_to_ptr.vmem [resolvable:$true] %s651_s14 }
  0x46   : > { %v291_v2 = vld [vmem:[%s290_s19] sm:$0xff]  ;;  %782 = vmatprep.subr.mxu0 %v1056_v1  ;;  %432 = vmatprep.subr.mxu1 %v415_v10  ;;  %v409_v18 = vld [vmem:[#allocation5 + $0xb8] sm:$0xff]  ;;  %v408_v20 = vld [vmem:[#allocation5 + $0xb0] sm:$0xff]  ;;  %s649_s12 = scalar_lea.hbm %s1275_s6, %s758_s13  ;;  %s978_s17 = scalar_lea.vmem %s652_s14, 128 }
  0x47   : > { %295 = vperm.xlu0 %891, %v291_v2   ;;  %783 = vmatpush3.msra.mxu0 %v313_v5  ;;  %v308_v19 = vld [vmem:[#allocation2 + $0x40] sm:$0xff]  ;;  %v407_v21 = vld [vmem:[#allocation5 + $0xa8] sm:$0xff]  ;;  %v307_v22 = vld [vmem:[#allocation2 + $0x38] sm:$0xff]  ;;  %p979_p9 = scmp.ne.s32.totalorder %s652_s14, %s978_s17  ;;  %s1059_s19 = smov [#allocation8]  }
  0x48   : > { %784 = vmatprep.subr.mxu0 %v1056_v1  ;;  %433 = vmatpush1.msra.mxu1 %v414_v11  ;;  %v406_v23 = vld [vmem:[#allocation5 + $0xa0] sm:$0xff]  ;;  %v405_v24 = vld [vmem:[#allocation5 + $0x98] sm:$0xff]  ;;  %v306_v25 = vld [vmem:[#allocation2 + $0x30] sm:$0xff]  ;;  %s982_s20 = sshll.u32 %s1059_s19, 4  ;;  %s983_s20 = int_to_ptr.vmem [resolvable:$false] %s982_s20 }
  0x49   : > { %785 = vmatpush3.msra.mxu0 %v312_v6  ;;  %434 = vmatprep.subr.mxu1 %v413_v12  ;;  %v404_v26 = vld [vmem:[#allocation5 + $0x90] sm:$0xff]  ;;  %v403_v27 = vld [vmem:[#allocation5 + $0x88] sm:$0xff]  ;;  %v402_v29 = vld [vmem:[#allocation5 + $0x80] sm:$0xff]  ;;  %p980_p10 = pnand %p979_p9, %p1133_p5  ;;  %s984_s25 = scalar_lea.vmem %s983_s20, 256 }
  0x4a   : > { %786 = vmatprep.subr.mxu0 %v1056_v1  ;;  %435 = vmatpush1.msra.mxu1 %v412_v14  ;;  %v305_v28 = vld [vmem:[#allocation2 + $0x28] sm:$0xff]  ;;  %v401_v30 = vld [vmem:[#allocation5 + $0x78] sm:$0xff]  ;;  %v304_v31 = vld [vmem:[#allocation2 + $0x20] sm:$0xff]  ;;  %p985_p7 = scmp.lt.s32.totalorder %s652_s14, %s983_s20  ;;  %p986_p8 = scmp.lt.s32.totalorder %s984_s25, %s978_s17 }
  0x4b   : > { %787 = vmatpush3.msra.mxu0 %v311_v7  ;;  %436 = vmatprep.subr.mxu1 %v411_v15  ;;  %v400_v32 = vld [vmem:[#allocation5 + $0x70] sm:$0xff]  ;;  %v399_v33 = vld [vmem:[#allocation5 + $0x68] sm:$0xff]  ;;  %v303_v34 = vld [vmem:[#allocation2 + $0x18] sm:$0xff]  ;;  %p981_p12 = pneg %p980_p10 }
  0x4c   : > { %788 = vmatprep.subr.mxu0 %v1056_v1  ;;  %437 = vmatpush1.msra.mxu1 %v410_v17  ;;  %v398_v35 = vld [vmem:[#allocation5 + $0x60] sm:$0xff]  ;;  %v397_v36 = vld [vmem:[#allocation5 + $0x58] sm:$0xff]  ;;  %v302_v37 = vld [vmem:[#allocation2 + $0x10] sm:$0xff]  ;;  %p987_p11 = por %p986_p8, %p985_p7 }
  0x4d   : > { %789 = vmatpush3.msra.mxu0 %v310_v13  ;;  %438 = vmatprep.subr.mxu1 %v409_v18  ;;  %v396_v38 = vld [vmem:[#allocation5 + $0x50] sm:$0xff]  ;;  %v395_v39 = vld [vmem:[#allocation5 + $0x48] sm:$0xff]  ;;  %v394_v41 = vld [vmem:[#allocation5 + $0x40] sm:$0xff] }
  0x4e   : > { %790 = vmatprep.subr.mxu0 %v1056_v1  ;;  %439 = vmatpush1.msra.mxu1 %v408_v20  ;;  %v301_v40 = vld [vmem:[#allocation2 + $0x8] sm:$0xff]  ;;  %v393_v42 = vld [vmem:[#allocation5 + $0x38] sm:$0xff]  ;;  %v300_v43 = vld [vmem:[#allocation2] sm:$0xff]  ;;  %p988_p0 = pnand %p987_p11, %p981_p12 }
  0x4f   : > { %791 = vmatpush3.msra.mxu0 %v309_v16  ;;  %440 = vmatprep.subr.mxu1 %v407_v21  ;;  %v392_v44 = vld [vmem:[#allocation5 + $0x30] sm:$0xff]  ;;  %v391_v45 = vld [vmem:[#allocation5 + $0x28] sm:$0xff]  ;;  %v390_v46 = vld [vmem:[#allocation5 + $0x20] sm:$0xff] }
  0x50   : > { %792 = vmatprep.subr.mxu0 %v1056_v1  ;;  %441 = vmatpush1.msra.mxu1 %v406_v23  ;;  %v389_v47 = vld [vmem:[#allocation5 + $0x18] sm:$0xff]  ;;  %v388_v48 = vld [vmem:[#allocation5 + $0x10] sm:$0xff]  ;;  %v387_v49 = vld [vmem:[#allocation5 + $0x8] sm:$0xff] }
  0x51   : > { %793 = vmatpush3.msra.mxu0 %v308_v19  ;;  %442 = vmatprep.subr.mxu1 %v405_v24  ;;  %v386_v54 = vld [vmem:[#allocation5] sm:$0xff]  ;;  %v542_v57 = vld [vmem:[#allocation7 + $0xf8] sm:$0xff]  ;;  %v541_v58 = vld [vmem:[#allocation7 + $0xf0] sm:$0xff] }
  0x52   : > { %794 = vmatprep.subr.mxu0 %v1056_v1  ;;  %443 = vmatpush1.msra.mxu1 %v404_v26  ;;  %v540_v59 = vld [vmem:[#allocation7 + $0xe8] sm:$0xff]  ;;  %v539_v60 = vld [vmem:[#allocation7 + $0xe0] sm:$0xff]  ;;  %v538_v61 = vld [vmem:[#allocation7 + $0xd8] sm:$0xff] }
  0x53   : > { %795 = vmatpush3.msra.mxu0 %v307_v22  ;;  %444 = vmatprep.subr.mxu1 %v403_v27  ;;  %v537_v62 = vld [vmem:[#allocation7 + $0xd0] sm:$0xff]  ;;  %v536_v63 = vld [vmem:[#allocation7 + $0xc8] sm:$0xff]  ;;  %v535_v0 = vld [vmem:[#allocation7 + $0xc0] sm:$0xff] }
  0x54   : > { %796 = vmatprep.subr.mxu0 %v1056_v1  ;;  %445 = vmatpush1.msra.mxu1 %v402_v29  ;;  %v533_v2 = vld [vmem:[#allocation7 + $0xb0] sm:$0xff]  ;;  %v532_v3 = vld [vmem:[#allocation7 + $0xa8] sm:$0xff]  ;;  %v531_v4 = vld [vmem:[#allocation7 + $0xa0] sm:$0xff] }
  0x55   : > { %797 = vmatpush3.msra.mxu0 %v306_v25  ;;  %446 = vmatprep.subr.mxu1 %v401_v30  ;;  %v530_v5 = vld [vmem:[#allocation7 + $0x98] sm:$0xff]  ;;  %v529_v6 = vld [vmem:[#allocation7 + $0x90] sm:$0xff]  ;;  %v528_v7 = vld [vmem:[#allocation7 + $0x88] sm:$0xff]  ;;  %v421_v25 = vshrl.u32 %v292_v50, 7 }
  0x56   : > { %798 = vmatprep.subr.mxu0 %v1056_v1  ;;  %447 = vmatpush1.msra.mxu1 %v400_v32  ;;  %v527_v8 = vld [vmem:[#allocation7 + $0x80] sm:$0xff]  ;;  %v526_v9 = vld [vmem:[#allocation7 + $0x78] sm:$0xff]  ;;  %v525_v10 = vld [vmem:[#allocation7 + $0x70] sm:$0xff] }
  0x57   : > { %799 = vmatpush3.msra.mxu0 %v305_v28  ;;  %448 = vmatprep.subr.mxu1 %v399_v33  ;;  %v524_v11 = vld [vmem:[#allocation7 + $0x68] sm:$0xff]  ;;  %v523_v12 = vld [vmem:[#allocation7 + $0x60] sm:$0xff]  ;;  %v522_v13 = vld [vmem:[#allocation7 + $0x58] sm:$0xff]  ;;  %v426_v26 = vsub.s32 1, %v421_v25  ;;  %v422_v33 = vsub.s32 0, %v421_v25 }
  0x58   : > { %800 = vmatprep.subr.mxu0 %v1056_v1  ;;  %449 = vmatpush1.msra.mxu1 %v398_v35  ;;  %v521_v14 = vld [vmem:[#allocation7 + $0x50] sm:$0xff]  ;;  %v520_v15 = vld [vmem:[#allocation7 + $0x48] sm:$0xff]  ;;  %v519_v16 = vld [vmem:[#allocation7 + $0x40] sm:$0xff] }
  0x59   : > { %801 = vmatpush3.msra.mxu0 %v304_v31  ;;  %450 = vmatprep.subr.mxu1 %v397_v36  ;;  %v518_v17 = vld [vmem:[#allocation7 + $0x38] sm:$0xff]  ;;  %v517_v18 = vld [vmem:[#allocation7 + $0x30] sm:$0xff]  ;;  %v516_v19 = vld [vmem:[#allocation7 + $0x28] sm:$0xff] }
  0x5a   : > { %802 = vmatprep.subr.mxu0 %v1056_v1  ;;  %451 = vmatpush1.msra.mxu1 %v396_v38  ;;  %v515_v20 = vld [vmem:[#allocation7 + $0x20] sm:$0xff]  ;;  %v514_v21 = vld [vmem:[#allocation7 + $0x18] sm:$0xff]  ;;  %v513_v22 = vld [vmem:[#allocation7 + $0x10] sm:$0xff] }
  0x5b   : > { %803 = vmatpush3.msra.mxu0 %v303_v34  ;;  %452 = vmatprep.subr.mxu1 %v395_v39  ;;  %v512_v23 = vld [vmem:[#allocation7 + $0x8] sm:$0xff]  ;;  %v511_v24 = vld [vmem:[#allocation7] sm:$0xff] }
  0x5c   : > { %804 = vmatprep.subr.mxu0 %v1056_v1  ;;  %453 = vmatpush1.msra.mxu1 %v394_v41  ;;  %v418_v27 = vld [vmem:[%s1272_s3] sm:$0x3] }
  0x5d   : > { %805 = vmatpush3.msra.mxu0 %v302_v37  ;;  %454 = vmatprep.subr.mxu1 %v393_v42  ;;  %v427_v28 = vrot.slane %v418_v27, %v426_v26  ;;  %v423_v36 = vrot.slane %v418_v27, %v422_v33 }
  0x5e   : > { %806 = vmatprep.subr.mxu0 %v1056_v1  ;;  %455 = vmatpush1.msra.mxu1 %v392_v44 }
  0x5f   : > { %807 = vmatpush3.msra.mxu0 %v301_v40  ;;  %456 = vmatprep.subr.mxu1 %v391_v45 }
  0x60   : > { %808 = vmatprep.subr.mxu0 %v1056_v1  ;;  %457 = vmatpush1.msra.mxu1 %v390_v46 }
  0x61   : > { %809 = vmatpush3.msra.mxu0 %v300_v43  ;;  %458 = vmatprep.subr.mxu1 %v389_v47  ;;  %v543_v43 = vld [vmem:[%s1274_s5] sm:$0x3] }
  0x62   : > { %459 = vmatpush1.msra.mxu1 %v388_v48  ;;  %555 = vmatprep.subr.mxu0 %v542_v57  ;;  %v552_v44 = vrot.slane %v543_v43, %v426_v26 }
  0x63   : > { %460 = vmatprep.subr.mxu1 %v387_v49 }
  0x64   : > { %461 = vmatpush1.msra.mxu1 %v386_v54 }
  0xc2   : > { %v296_v52 = vpop.permute.xlu0 %295 }
  0xc3   : > { %vm297_vm1 = vcmp.eq.s32.totalorder %v296_v52, %v293_v51  ;;  %v548_v51 = vrot.slane %v543_v43, %v422_v33 }
  0xc4   : > { %811 = vmatmul.mubr.msk.f32.vlgmr.msra.gmra.mxu0 %vm297_vm1, %v1058_v53 }
  0xc5   : > { %619 = vmatprep.mubr.f32.mxu0 %v1056_v1  ;;  %556 = vmatpush1.msra.mxu0 %v541_v58  ;;  %v534_v1 = vld [vmem:[#allocation7 + $0xb8] sm:$0xff] }
  0xc6   : > { %557 = vmatprep.subr.mxu0 %v540_v59 }
  0xc7   : > { %558 = vmatpush1.msra.mxu0 %v539_v60 }
  0xc8   : > { %559 = vmatprep.subr.mxu0 %v538_v61 }
  0xc9   : > { %560 = vmatpush1.msra.mxu0 %v537_v62 }
  0xca   : > { %561 = vmatprep.subr.mxu0 %v536_v63 }
  0xcb   : > { %562 = vmatpush1.msra.mxu0 %v535_v0 }
  0xcc   : > { %563 = vmatprep.subr.mxu0 %v534_v1 }
  0xcd   : > { %564 = vmatpush1.msra.mxu0 %v533_v2 }
  0xce   : > { %565 = vmatprep.subr.mxu0 %v532_v3 }
  0xcf   : > { %566 = vmatpush1.msra.mxu0 %v531_v4 }
  0xd0   : > { %567 = vmatprep.subr.mxu0 %v530_v5 }
  0xd1   : > { %568 = vmatpush1.msra.mxu0 %v529_v6 }
  0xd2   : > { %569 = vmatprep.subr.mxu0 %v528_v7 }
  0xd3   : > { %570 = vmatpush1.msra.mxu0 %v527_v8 }
  0xd4   : > { %571 = vmatprep.subr.mxu0 %v526_v9 }
  0xd5   : > { %572 = vmatpush1.msra.mxu0 %v525_v10 }
  0xd6   : > { %573 = vmatprep.subr.mxu0 %v524_v11 }
  0xd7   : > { %574 = vmatpush1.msra.mxu0 %v523_v12 }
  0xd8   : > { %575 = vmatprep.subr.mxu0 %v522_v13 }
  0xd9   : > { %576 = vmatpush1.msra.mxu0 %v521_v14 }
  0xda   : > { %577 = vmatprep.subr.mxu0 %v520_v15 }
  0xdb   : > { %578 = vmatpush1.msra.mxu0 %v519_v16 }
  0xdc   : > { %579 = vmatprep.subr.mxu0 %v518_v17 }
  0xdd   : > { %580 = vmatpush1.msra.mxu0 %v517_v18 }
  0xde   : > { %581 = vmatprep.subr.mxu0 %v516_v19 }
  0xdf   : > { %582 = vmatpush1.msra.mxu0 %v515_v20 }
  0xe0   : > { %583 = vmatprep.subr.mxu0 %v514_v21 }
  0xe1   : > { %584 = vmatpush1.msra.mxu0 %v513_v22 }
  0xe2   : > { %585 = vmatprep.subr.mxu0 %v512_v23 }
  0xe3   : > { %586 = vmatpush1.msra.mxu0 %v511_v24 }
 0x184   : > { %v1223_v55 = vpop.f32.mrf.mxu0 }
 0x185   : > { %495 = vmatmul.mubr.f32.vlgmr.msra.gmra.mxu1 %v1223_v55 }
 0x186   : > { %v812_v56 = vpop.f32.mrf.mxu0 }
 0x245   : > { %v496_v29 = vpop.f32.mrf.mxu1 }
 0x246   : > { %v497_v37 = vadd.f32 %v496_v29, %v423_v36 }
 0x247   : > { %v498_v30 = vpop.f32.mrf.mxu1 }
 0x248   : > { %v499_v31 = vadd.f32 %v498_v30, %v427_v28  ;;  %v501_v38 = vmax.f32 %v497_v37, 0.0 }
 0x24a   : > { %v755_v32 = vmul.f32 -1.442695, %v499_v31  ;;  %v508_v39 = vsub.f32 %v501_v38, %v1223_v55 }
 0x24c   : > { %892 = vpow2.f32 %v755_v32 }
 0x259   : > { %v893_v34 = vpop.eup %892 }
 0x25a   : > { %v505_v35 = vadd.f32 1.0, %v893_v34 }
 0x25c   : > { %894 = vrcp.f32 %v505_v35 }
 0x269   : > { %v895_v40 = vpop.eup %894 }
 0x26a   : > { %v509_v41 = vmul.f32 %v895_v40, %v508_v39 }
 0x26c   : > { %v510_v42 = vadd.f32 %v509_v41, %v1223_v55 }
 0x26e   : > { %620 = vmatmul.mubr.f32.vlgmr.msra.gmra.mxu0 %v510_v42 }
 0x32e   : > { %v621_v45 = vpop.f32.mrf.mxu0 }
 0x32f   : > { %v622_v52 = vadd.f32 %v621_v45, %v548_v51 }
 0x330   : > { %v623_v46 = vpop.f32.mrf.mxu0 }
 0x331   : > { %v624_v47 = vadd.f32 %v623_v46, %v552_v44  ;;  %v626_v53 = vmax.f32 %v622_v52, 0.0 }
 0x333   : > { %v756_v48 = vmul.f32 -1.442695, %v624_v47  ;;  %v633_v54 = vsub.f32 %v626_v53, %v510_v42 }
 0x335   : > { %896 = vpow2.f32 %v756_v48 }
 0x342   : > { %v897_v49 = vpop.eup %896 }
 0x343   : > { %v630_v50 = vadd.f32 1.0, %v897_v49 }
 0x345   : > { %898 = vrcp.f32 %v630_v50 }
 0x352   : > { %v899_v55 = vpop.eup %898 }
 0x353   : > { %v634_v56 = vmul.f32 %v899_v55, %v633_v54 }
 0x355   : > { %v635_v57 = vadd.f32 %v634_v56, %v510_v42 }
 0x357   : > { %636 = vst [vmem:[%s286_s15] sm:$0xff] %v635_v57 }
 0x358   : > { %991 = shalt.err (!%p988_p0)
}
 0x359   : > { %s992_s26 = scalar_lea.hbm %s649_s12, 128  ;;  %s996_s10 = scalar_lea.hbm %s1275_s6, 256 }
 0x35a   : > { %p993_p1 = scmp.ne.s32.totalorder %s649_s12, %s992_s26  ;;  %p997_p4 = scmp.lt.s32.totalorder %s649_s12, %s1275_s6 }
 0x35b   : > { %p998_p13 = scmp.lt.s32.totalorder %s996_s10, %s992_s26 }
 0x35c   : > { %p994_p2 = pnand %p993_p1, %p1133_p5 }
 0x35d   : > { %p999_p9 = por %p998_p13, %p997_p4 }
 0x35e   : > { %p995_p3 = pneg %p994_p2 }
 0x360   : > { %p1000_p10 = pnand %p999_p9, %p995_p3 }
 0x362   : > { %1003 = shalt.err (!%p1000_p10)
}
 0x363   : > { %825 = dma.vmem_to_hbm [thread:$0]  (%p1133_p5), %s652_s14, 128, %s649_s12, %s638_s16  }
 0x364 PF: > { %p847_p12 = scmp.ge.s32.totalorder %s1046_s24, 2  ;;  %s663_s15 = sand.u32 1, %s1034_s21  }
 0x365   : > { %s664_s18 = scalar_lea.sflag [#allocation4], %s663_s15 }
 0x366   : > { %p838_p7 = pnand %p847_p12, %p1137_p6 }
 0x368   : > { %p839_p8 = pneg %p838_p7 }
 0x36a   : > { %1029 = dma.done.wait (%p839_p8), %s664_s18, 128  }
 0x36b   : > { %1031 = vsyncadd (%p839_p8), %s664_s18, 4294967168  ;;  %p18_p11 = scmp.ge.s32.totalorder %s1120_s27, 4   ;;  %s1280_s21 = smov %s1038_s22 }
 0x36c   : > { %s1281_s22 = smov %s1042_s23  ;;  %s1282_s23 = smov %s1131_s30 }
 0x36d   : > { %s1283_s24 = smov %s1120_s27  ;;  %20 = sbr.rel (!%p18_p11) target bundleno = 5 (0x5), region = 92 }
 0x372   :  { %669 = vsyncpa [#allocation3], 1 }
 0x373   :  { %671 = vsyncpa [#allocation3 + $0x1], 1 }
 0x374   :  { %672 = vsyncpa [#allocation6], 1 }
 0x375   :  { %673 = vsyncpa [#allocation4], 1 }
 0x376   :  { %675 = vsyncpa [#allocation4 + $0x1], 1 }

// kernel: tpu_custom_call.1
= control target key start
LH: loop header
LB: loop body
LE: loop exit
PB: predicated region body
PF: predicated region fallthrough
CT: control target
= control target key end

     0   :  { %11 = vsyncpa [#allocation3], 0  ;;  %s1269_s0 = inlined_call_operand.vmem [shape: s32[16,1], index: 0, kind: input, shape index: {}]   ;;  %s1270_s1 = inlined_call_operand.hbm [shape: f32[128,128], index: 1, kind: input, shape index: {}]   ;;  %s1271_s2 = inlined_call_operand.hbm [shape: f32[128,256], index: 2, kind: input, shape index: {}]   ;;  %s1272_s3 = inlined_call_operand.vmem [shape: f32[1,256], index: 3, kind: input, shape index: {}]   ;;  %s1273_s4 = inlined_call_operand.hbm [shape: f32[128,256], index: 4, kind: input, shape index: {}]   ;;  %s1274_s5 = inlined_call_operand.vmem [shape: f32[1,256], index: 5, kind: input, shape index: {}]   ;;  %s1275_s6 = inlined_call_operand.hbm [shape: f32[16,128], index: 6, kind: output, shape index: {}]  }
   0x1   :  { %12 = vsyncpa [#allocation6], 0 }
   0x2   :  { %13 = vsyncpa [#allocation4], 0 }
   0x3   :  { %15 = vsyncpa [#allocation4 + $0x1], 0  ;;  %s1095_s21 = smov 0   ;;  %s1097_s22 = smov 0  }
   0x4   :  { %s1099_s23 = smov 0   ;;  %s1101_s24 = smov 0  }
   0x5 LB: > { %s1116_s25 = sadd.s32 4294967295, %s1046_s24   ;;  %s741_s26 = sadd.s32 4294967294, %s1046_s24   ;;  %s1046_s24 = sphi %s1101_s24, %s1283_s24   ;;  %s1042_s23 = sphi %s1099_s23, %s1282_s23   ;;  %s1038_s22 = sphi %s1097_s22, %s1281_s22   ;;  %s1034_s21 = sphi %s1095_s21, %s1280_s21  }
   0x6   : > { %s1120_s27 = sadd.s32 1, %s1046_s24   ;;  %s159_s28 = sadd.s32 1, %s1042_s23 }
   0x7   : > { %s156_s29 = ssub.s32 %s1046_s24, %s1120_s27  ;;  %p169_p0 = scmp.ne.s32.totalorder %s1042_s23, %s1038_s22 }
   0x8   : > { %p157_p1 = scmp.eq.s32.totalorder %s156_s29, 0  ;;  %p170_p2 = scmp.eq.s32.totalorder %s1116_s25, 1 }
   0x9   : > { %p175_p3 = scmp.ne.s32.totalorder %s1038_s22, %s1034_s21  ;;  %p176_p4 = scmp.eq.s32.totalorder %s741_s26, 1 }
   0xa   : > { %s1131_s30 = scalar_select %p157_p1, %s1042_s23, %s159_s28  }
   0xb   : > { %p1133_p5 = por %p170_p2, %p169_p0  ;;  %p1137_p6 = por %p176_p4, %p175_p3 }
   0xc   : > { %p742_p7 = scmp.ge.s32.totalorder %s1046_s24, 1  ;;  %p183_p8 = scmp.lt.s32.totalorder %s1046_s24, 3 }
   0xd   : > { %p841_p9 = scmp.eq.s32.totalorder %s1116_s25, 0  ;;  %s1048_s10 = smov [#allocation5]  }
   0xe   : > { %p1144_p10 = pnand %p742_p7, %p183_p8  ;;  %s208_s11 = sshll.u32 %s1048_s10, 4  ;;  %s209_s11 = int_to_ptr.vmem [resolvable:$true] %s208_s11 }
   0xf   : > { %s1049_s13 = smov [#allocation2]   ;;  %s911_s15 = scalar_lea.vmem %s209_s11, 4096 }
  0x10   : > { %p827_p11 = pneg %p1144_p10  ;;  %s195_s14 = sshll.u32 %s1049_s13, 4  ;;  %s196_s14 = int_to_ptr.vmem [resolvable:$true] %s195_s14 }
  0x11   : > { %p912_p0 = scmp.ne.s32.totalorder %s209_s11, %s911_s15  ;;  %p919_p3 = scmp.lt.s32.totalorder %s209_s11, %s209_s11 }
  0x12   : > { %p1152_p12 = pnand %p841_p9, %p827_p11  ;;  %p920_p4 = scmp.lt.s32.totalorder %s911_s15, %s911_s15 }
  0x14   : > { %p902_p13 = pneg %p1152_p12  ;;  %p921_p7 = por %p920_p4, %p919_p3 }
  0x16   : > { %p914_p1 = pnand %p912_p0, %p902_p13 }
  0x18   : > { %p915_p2 = pneg %p914_p1 }
  0x1a   : > { %p922_p8 = pnand %p921_p7, %p915_p2 }
  0x1c   : > { %925 = shalt.err (!%p922_p8)
}
  0x1d   : > { %s1050_s16 = smov 256   ;;  %s1051_s17 = smov 16  }
  0x1e   : > { %833 = dma.hbm_to_vmem [thread:$0]  (!%p1152_p12), %s1271_s2, 4096, %s209_s11, [#allocation6], %s1050_s16, %s1050_s16, %s1051_s17  }
  0x1f   : > { %s937_s20 = scalar_lea.vmem %s196_s14, 2048  ;;  %p945_p2 = scmp.lt.s32.totalorder %s196_s14, %s196_s14 }
  0x20   : > { %p938_p11 = scmp.ne.s32.totalorder %s196_s14, %s937_s20  ;;  %p946_p3 = scmp.lt.s32.totalorder %s937_s20, %s937_s20 }
  0x22   : > { %p940_p0 = pnand %p938_p11, %p902_p13  ;;  %p947_p4 = por %p946_p3, %p945_p2 }
  0x24   : > { %p941_p1 = pneg %p940_p0 }
  0x26   : > { %p948_p7 = pnand %p947_p4, %p941_p1 }
  0x28   : > { %951 = shalt.err (!%p948_p7)
}
  0x29   : > { %s1052_s26 = smov 128   ;;  %s1053_s28 = smov 8  }
  0x2a   : > { %830 = dma.hbm_to_vmem [thread:$0]  (!%p1152_p12), %s1270_s1, 2048, %s196_s14, [#allocation3], %s1052_s26, %s1052_s26, %s1053_s28  }
  0x2b   : > { %s1054_s11 = smov [#allocation7]  }
  0x2c   : > { %s224_s13 = sshll.u32 %s1054_s11, 4  ;;  %s225_s13 = int_to_ptr.vmem [resolvable:$true] %s224_s13 }
  0x2d   : > { %s963_s15 = scalar_lea.vmem %s225_s13, 4096  ;;  %p971_p1 = scmp.lt.s32.totalorder %s225_s13, %s225_s13 }
  0x2e   : > { %p964_p8 = scmp.ne.s32.totalorder %s225_s13, %s963_s15  ;;  %p972_p2 = scmp.lt.s32.totalorder %s963_s15, %s963_s15 }
  0x30   : > { %p966_p11 = pnand %p964_p8, %p902_p13  ;;  %p973_p3 = por %p972_p2, %p971_p1 }
  0x32   : > { %p967_p0 = pneg %p966_p11 }
  0x34   : > { %p974_p4 = pnand %p973_p3, %p967_p0 }
  0x36   : > { %977 = shalt.err (!%p974_p4)
}
  0x37   : > { %836 = dma.hbm_to_vmem [thread:$0]  (!%p1152_p12), %s1273_s4, 4096, %s225_s13, [#allocation6], %s1050_s16, %s1050_s16, %s1051_s17  }
  0x38   : > { %250 = sbr.rel (%p1144_p10) target bundleno = 868 (0x364), region = 44 }
  0x3d   : > { %1021 = dma.done.wait (%p841_p9), [#allocation3], 2048  }
  0x3e   : > { %1023 = vsyncadd (%p841_p9), [#allocation3], 4294965248 }
  0x3f   : > { %1025 = dma.done.wait (%p841_p9), [#allocation6], 8192  }
  0x40   : > { %1027 = vsyncadd (%p841_p9), [#allocation6], 4294959104  ;;  %p287_p13 = scmp.lt.s32.totalorder %s1116_s25, 1  ;;  %v1055_v0 = vmov 0   ;;  %v1056_v1 = vmov 0.0   ;;  %vm1057_vm0 = vmmov 0   ;;  %v292_v50 = vlaneseq }
  0x41   : > { %891 = vset.pattern.permute.xlu0 %v1055_v0  ;;  %778 = vmatprep.subr.mxu0 %v1056_v1  ;;  %v315_v3 = vld [vmem:[#allocation2 + $0x78] sm:$0xff]  ;;  %v314_v4 = vld [vmem:[#allocation2 + $0x70] sm:$0xff]  ;;  %v313_v5 = vld [vmem:[#allocation2 + $0x68] sm:$0xff]  ;;  %v1058_v53 = vmov 1.0   ;;  %s284_s10 = sand.u32 1, %s1038_s22   ;;  %s758_s13 = sshll.u32 %s1116_s25, 7 }
  0x42   : > { %s288_s9 = scalar_select %p287_p13, %s1116_s25, 1  ;;  %494 = vmatprep.mubr.f32.mxu1 %v1056_v1  ;;  %810 = vmatprep.mubr.msk.f32.mxu0 %vm1057_vm0, %v1056_v1  ;;  %v312_v6 = vld [vmem:[#allocation2 + $0x60] sm:$0xff]  ;;  %v311_v7 = vld [vmem:[#allocation2 + $0x58] sm:$0xff]  ;;  %v416_v9 = vld [vmem:[#allocation5 + $0xf0] sm:$0xff]  ;;  %v293_v51 = vand.u32 127, %v292_v50 }
  0x43   : > { %779 = vmatpush3.msra.mxu0 %v315_v3  ;;  %v417_v8 = vld [vmem:[#allocation5 + $0xf8] sm:$0xff]  ;;  %v415_v10 = vld [vmem:[#allocation5 + $0xe8] sm:$0xff]  ;;  %v414_v11 = vld [vmem:[#allocation5 + $0xe0] sm:$0xff]  ;;  %s751_s11 = sshll.u32 %s284_s10, 3  ;;  %s638_s16 = scalar_lea.sflag [#allocation4], %s284_s10 }
  0x44   : > { %s752_s12 = sshll.u32 %s288_s9, 3  ;;  %780 = vmatprep.subr.mxu0 %v1056_v1  ;;  %430 = vmatprep.subr.mxu1 %v417_v8  ;;  %v413_v12 = vld [vmem:[#allocation5 + $0xd8] sm:$0xff]  ;;  %v310_v13 = vld [vmem:[#allocation2 + $0x50] sm:$0xff]  ;;  %v411_v15 = vld [vmem:[#allocation5 + $0xc8] sm:$0xff]  ;;  %s286_s15 = scalar_lea.vmem [#allocation8], %s751_s11 }
  0x45   : > { %s290_s19 = scalar_lea.vmem %s1269_s0, %s752_s12  ;;  %781 = vmatpush3.msra.mxu0 %v314_v4  ;;  %431 = vmatpush1.msra.mxu1 %v416_v9  ;;  %v412_v14 = vld [vmem:[#allocation5 + $0xd0] sm:$0xff]  ;;  %v309_v16 = vld [vmem:[#allocation2 + $0x48] sm:$0xff]  ;;  %v410_v17 = vld [vmem:[#allocation5 + $0xc0] sm:$0xff]  ;;  %s651_s14 = sshll.u32 %s286_s15, 4  ;;  %s652_s14 = int_to_ptr.vmem [resolvable:$true] %s651_s14 }
  0x46   : > { %v291_v2 = vld [vmem:[%s290_s19] sm:$0xff]  ;;  %782 = vmatprep.subr.mxu0 %v1056_v1  ;;  %432 = vmatprep.subr.mxu1 %v415_v10  ;;  %v409_v18 = vld [vmem:[#allocation5 + $0xb8] sm:$0xff]  ;;  %v408_v20 = vld [vmem:[#allocation5 + $0xb0] sm:$0xff]  ;;  %s649_s12 = scalar_lea.hbm %s1275_s6, %s758_s13  ;;  %s978_s17 = scalar_lea.vmem %s652_s14, 128 }
  0x47   : > { %295 = vperm.xlu0 %891, %v291_v2   ;;  %783 = vmatpush3.msra.mxu0 %v313_v5  ;;  %v308_v19 = vld [vmem:[#allocation2 + $0x40] sm:$0xff]  ;;  %v407_v21 = vld [vmem:[#allocation5 + $0xa8] sm:$0xff]  ;;  %v307_v22 = vld [vmem:[#allocation2 + $0x38] sm:$0xff]  ;;  %p979_p9 = scmp.ne.s32.totalorder %s652_s14, %s978_s17  ;;  %s1059_s19 = smov [#allocation8]  }
  0x48   : > { %784 = vmatprep.subr.mxu0 %v1056_v1  ;;  %433 = vmatpush1.msra.mxu1 %v414_v11  ;;  %v406_v23 = vld [vmem:[#allocation5 + $0xa0] sm:$0xff]  ;;  %v405_v24 = vld [vmem:[#allocation5 + $0x98] sm:$0xff]  ;;  %v306_v25 = vld [vmem:[#allocation2 + $0x30] sm:$0xff]  ;;  %s982_s20 = sshll.u32 %s1059_s19, 4  ;;  %s983_s20 = int_to_ptr.vmem [resolvable:$false] %s982_s20 }
  0x49   : > { %785 = vmatpush3.msra.mxu0 %v312_v6  ;;  %434 = vmatprep.subr.mxu1 %v413_v12  ;;  %v404_v26 = vld [vmem:[#allocation5 + $0x90] sm:$0xff]  ;;  %v403_v27 = vld [vmem:[#allocation5 + $0x88] sm:$0xff]  ;;  %v402_v29 = vld [vmem:[#allocation5 + $0x80] sm:$0xff]  ;;  %p980_p10 = pnand %p979_p9, %p1133_p5  ;;  %s984_s25 = scalar_lea.vmem %s983_s20, 256 }
  0x4a   : > { %786 = vmatprep.subr.mxu0 %v1056_v1  ;;  %435 = vmatpush1.msra.mxu1 %v412_v14  ;;  %v305_v28 = vld [vmem:[#allocation2 + $0x28] sm:$0xff]  ;;  %v401_v30 = vld [vmem:[#allocation5 + $0x78] sm:$0xff]  ;;  %v304_v31 = vld [vmem:[#allocation2 + $0x20] sm:$0xff]  ;;  %p985_p7 = scmp.lt.s32.totalorder %s652_s14, %s983_s20  ;;  %p986_p8 = scmp.lt.s32.totalorder %s984_s25, %s978_s17 }
  0x4b   : > { %787 = vmatpush3.msra.mxu0 %v311_v7  ;;  %436 = vmatprep.subr.mxu1 %v411_v15  ;;  %v400_v32 = vld [vmem:[#allocation5 + $0x70] sm:$0xff]  ;;  %v399_v33 = vld [vmem:[#allocation5 + $0x68] sm:$0xff]  ;;  %v303_v34 = vld [vmem:[#allocation2 + $0x18] sm:$0xff]  ;;  %p981_p12 = pneg %p980_p10 }
  0x4c   : > { %788 = vmatprep.subr.mxu0 %v1056_v1  ;;  %437 = vmatpush1.msra.mxu1 %v410_v17  ;;  %v398_v35 = vld [vmem:[#allocation5 + $0x60] sm:$0xff]  ;;  %v397_v36 = vld [vmem:[#allocation5 + $0x58] sm:$0xff]  ;;  %v302_v37 = vld [vmem:[#allocation2 + $0x10] sm:$0xff]  ;;  %p987_p11 = por %p986_p8, %p985_p7 }
  0x4d   : > { %789 = vmatpush3.msra.mxu0 %v310_v13  ;;  %438 = vmatprep.subr.mxu1 %v409_v18  ;;  %v396_v38 = vld [vmem:[#allocation5 + $0x50] sm:$0xff]  ;;  %v395_v39 = vld [vmem:[#allocation5 + $0x48] sm:$0xff]  ;;  %v394_v41 = vld [vmem:[#allocation5 + $0x40] sm:$0xff] }
  0x4e   : > { %790 = vmatprep.subr.mxu0 %v1056_v1  ;;  %439 = vmatpush1.msra.mxu1 %v408_v20  ;;  %v301_v40 = vld [vmem:[#allocation2 + $0x8] sm:$0xff]  ;;  %v393_v42 = vld [vmem:[#allocation5 + $0x38] sm:$0xff]  ;;  %v300_v43 = vld [vmem:[#allocation2] sm:$0xff]  ;;  %p988_p0 = pnand %p987_p11, %p981_p12 }
  0x4f   : > { %791 = vmatpush3.msra.mxu0 %v309_v16  ;;  %440 = vmatprep.subr.mxu1 %v407_v21  ;;  %v392_v44 = vld [vmem:[#allocation5 + $0x30] sm:$0xff]  ;;  %v391_v45 = vld [vmem:[#allocation5 + $0x28] sm:$0xff]  ;;  %v390_v46 = vld [vmem:[#allocation5 + $0x20] sm:$0xff] }
  0x50   : > { %792 = vmatprep.subr.mxu0 %v1056_v1  ;;  %441 = vmatpush1.msra.mxu1 %v406_v23  ;;  %v389_v47 = vld [vmem:[#allocation5 + $0x18] sm:$0xff]  ;;  %v388_v48 = vld [vmem:[#allocation5 + $0x10] sm:$0xff]  ;;  %v387_v49 = vld [vmem:[#allocation5 + $0x8] sm:$0xff] }
  0x51   : > { %793 = vmatpush3.msra.mxu0 %v308_v19  ;;  %442 = vmatprep.subr.mxu1 %v405_v24  ;;  %v386_v54 = vld [vmem:[#allocation5] sm:$0xff]  ;;  %v542_v57 = vld [vmem:[#allocation7 + $0xf8] sm:$0xff]  ;;  %v541_v58 = vld [vmem:[#allocation7 + $0xf0] sm:$0xff] }
  0x52   : > { %794 = vmatprep.subr.mxu0 %v1056_v1  ;;  %443 = vmatpush1.msra.mxu1 %v404_v26  ;;  %v540_v59 = vld [vmem:[#allocation7 + $0xe8] sm:$0xff]  ;;  %v539_v60 = vld [vmem:[#allocation7 + $0xe0] sm:$0xff]  ;;  %v538_v61 = vld [vmem:[#allocation7 + $0xd8] sm:$0xff] }
  0x53   : > { %795 = vmatpush3.msra.mxu0 %v307_v22  ;;  %444 = vmatprep.subr.mxu1 %v403_v27  ;;  %v537_v62 = vld [vmem:[#allocation7 + $0xd0] sm:$0xff]  ;;  %v536_v63 = vld [vmem:[#allocation7 + $0xc8] sm:$0xff]  ;;  %v535_v0 = vld [vmem:[#allocation7 + $0xc0] sm:$0xff] }
  0x54   : > { %796 = vmatprep.subr.mxu0 %v1056_v1  ;;  %445 = vmatpush1.msra.mxu1 %v402_v29  ;;  %v533_v2 = vld [vmem:[#allocation7 + $0xb0] sm:$0xff]  ;;  %v532_v3 = vld [vmem:[#allocation7 + $0xa8] sm:$0xff]  ;;  %v531_v4 = vld [vmem:[#allocation7 + $0xa0] sm:$0xff] }
  0x55   : > { %797 = vmatpush3.msra.mxu0 %v306_v25  ;;  %446 = vmatprep.subr.mxu1 %v401_v30  ;;  %v530_v5 = vld [vmem:[#allocation7 + $0x98] sm:$0xff]  ;;  %v529_v6 = vld [vmem:[#allocation7 + $0x90] sm:$0xff]  ;;  %v528_v7 = vld [vmem:[#allocation7 + $0x88] sm:$0xff]  ;;  %v421_v25 = vshrl.u32 %v292_v50, 7 }
  0x56   : > { %798 = vmatprep.subr.mxu0 %v1056_v1  ;;  %447 = vmatpush1.msra.mxu1 %v400_v32  ;;  %v527_v8 = vld [vmem:[#allocation7 + $0x80] sm:$0xff]  ;;  %v526_v9 = vld [vmem:[#allocation7 + $0x78] sm:$0xff]  ;;  %v525_v10 = vld [vmem:[#allocation7 + $0x70] sm:$0xff] }
  0x57   : > { %799 = vmatpush3.msra.mxu0 %v305_v28  ;;  %448 = vmatprep.subr.mxu1 %v399_v33  ;;  %v524_v11 = vld [vmem:[#allocation7 + $0x68] sm:$0xff]  ;;  %v523_v12 = vld [vmem:[#allocation7 + $0x60] sm:$0xff]  ;;  %v522_v13 = vld [vmem:[#allocation7 + $0x58] sm:$0xff]  ;;  %v426_v26 = vsub.s32 1, %v421_v25  ;;  %v422_v33 = vsub.s32 0, %v421_v25 }
  0x58   : > { %800 = vmatprep.subr.mxu0 %v1056_v1  ;;  %449 = vmatpush1.msra.mxu1 %v398_v35  ;;  %v521_v14 = vld [vmem:[#allocation7 + $0x50] sm:$0xff]  ;;  %v520_v15 = vld [vmem:[#allocation7 + $0x48] sm:$0xff]  ;;  %v519_v16 = vld [vmem:[#allocation7 + $0x40] sm:$0xff] }
  0x59   : > { %801 = vmatpush3.msra.mxu0 %v304_v31  ;;  %450 = vmatprep.subr.mxu1 %v397_v36  ;;  %v518_v17 = vld [vmem:[#allocation7 + $0x38] sm:$0xff]  ;;  %v517_v18 = vld [vmem:[#allocation7 + $0x30] sm:$0xff]  ;;  %v516_v19 = vld [vmem:[#allocation7 + $0x28] sm:$0xff] }
  0x5a   : > { %802 = vmatprep.subr.mxu0 %v1056_v1  ;;  %451 = vmatpush1.msra.mxu1 %v396_v38  ;;  %v515_v20 = vld [vmem:[#allocation7 + $0x20] sm:$0xff]  ;;  %v514_v21 = vld [vmem:[#allocation7 + $0x18] sm:$0xff]  ;;  %v513_v22 = vld [vmem:[#allocation7 + $0x10] sm:$0xff] }
  0x5b   : > { %803 = vmatpush3.msra.mxu0 %v303_v34  ;;  %452 = vmatprep.subr.mxu1 %v395_v39  ;;  %v512_v23 = vld [vmem:[#allocation7 + $0x8] sm:$0xff]  ;;  %v511_v24 = vld [vmem:[#allocation7] sm:$0xff] }
  0x5c   : > { %804 = vmatprep.subr.mxu0 %v1056_v1  ;;  %453 = vmatpush1.msra.mxu1 %v394_v41  ;;  %v418_v27 = vld [vmem:[%s1272_s3] sm:$0x3] }
  0x5d   : > { %805 = vmatpush3.msra.mxu0 %v302_v37  ;;  %454 = vmatprep.subr.mxu1 %v393_v42  ;;  %v427_v28 = vrot.slane %v418_v27, %v426_v26  ;;  %v423_v36 = vrot.slane %v418_v27, %v422_v33 }
  0x5e   : > { %806 = vmatprep.subr.mxu0 %v1056_v1  ;;  %455 = vmatpush1.msra.mxu1 %v392_v44 }
  0x5f   : > { %807 = vmatpush3.msra.mxu0 %v301_v40  ;;  %456 = vmatprep.subr.mxu1 %v391_v45 }
  0x60   : > { %808 = vmatprep.subr.mxu0 %v1056_v1  ;;  %457 = vmatpush1.msra.mxu1 %v390_v46 }
  0x61   : > { %809 = vmatpush3.msra.mxu0 %v300_v43  ;;  %458 = vmatprep.subr.mxu1 %v389_v47  ;;  %v543_v43 = vld [vmem:[%s1274_s5] sm:$0x3] }
  0x62   : > { %459 = vmatpush1.msra.mxu1 %v388_v48  ;;  %555 = vmatprep.subr.mxu0 %v542_v57  ;;  %v552_v44 = vrot.slane %v543_v43, %v426_v26 }
  0x63   : > { %460 = vmatprep.subr.mxu1 %v387_v49 }
  0x64   : > { %461 = vmatpush1.msra.mxu1 %v386_v54 }
  0xc2   : > { %v296_v52 = vpop.permute.xlu0 %295 }
  0xc3   : > { %vm297_vm1 = vcmp.eq.s32.totalorder %v296_v52, %v293_v51  ;;  %v548_v51 = vrot.slane %v543_v43, %v422_v33 }
  0xc4   : > { %811 = vmatmul.mubr.msk.f32.vlgmr.msra.gmra.mxu0 %vm297_vm1, %v1058_v53 }
  0xc5   : > { %619 = vmatprep.mubr.f32.mxu0 %v1056_v1  ;;  %556 = vmatpush1.msra.mxu0 %v541_v58  ;;  %v534_v1 = vld [vmem:[#allocation7 + $0xb8] sm:$0xff] }
  0xc6   : > { %557 = vmatprep.subr.mxu0 %v540_v59 }
  0xc7   : > { %558 = vmatpush1.msra.mxu0 %v539_v60 }
  0xc8   : > { %559 = vmatprep.subr.mxu0 %v538_v61 }
  0xc9   : > { %560 = vmatpush1.msra.mxu0 %v537_v62 }
  0xca   : > { %561 = vmatprep.subr.mxu0 %v536_v63 }
  0xcb   : > { %562 = vmatpush1.msra.mxu0 %v535_v0 }
  0xcc   : > { %563 = vmatprep.subr.mxu0 %v534_v1 }
  0xcd   : > { %564 = vmatpush1.msra.mxu0 %v533_v2 }
  0xce   : > { %565 = vmatprep.subr.mxu0 %v532_v3 }
  0xcf   : > { %566 = vmatpush1.msra.mxu0 %v531_v4 }
  0xd0   : > { %567 = vmatprep.subr.mxu0 %v530_v5 }
  0xd1   : > { %568 = vmatpush1.msra.mxu0 %v529_v6 }
  0xd2   : > { %569 = vmatprep.subr.mxu0 %v528_v7 }
  0xd3   : > { %570 = vmatpush1.msra.mxu0 %v527_v8 }
  0xd4   : > { %571 = vmatprep.subr.mxu0 %v526_v9 }
  0xd5   : > { %572 = vmatpush1.msra.mxu0 %v525_v10 }
  0xd6   : > { %573 = vmatprep.subr.mxu0 %v524_v11 }
  0xd7   : > { %574 = vmatpush1.msra.mxu0 %v523_v12 }
  0xd8   : > { %575 = vmatprep.subr.mxu0 %v522_v13 }
  0xd9   : > { %576 = vmatpush1.msra.mxu0 %v521_v14 }
  0xda   : > { %577 = vmatprep.subr.mxu0 %v520_v15 }
  0xdb   : > { %578 = vmatpush1.msra.mxu0 %v519_v16 }
  0xdc   : > { %579 = vmatprep.subr.mxu0 %v518_v17 }
  0xdd   : > { %580 = vmatpush1.msra.mxu0 %v517_v18 }
  0xde   : > { %581 = vmatprep.subr.mxu0 %v516_v19 }
  0xdf   : > { %582 = vmatpush1.msra.mxu0 %v515_v20 }
  0xe0   : > { %583 = vmatprep.subr.mxu0 %v514_v21 }
  0xe1   : > { %584 = vmatpush1.msra.mxu0 %v513_v22 }
  0xe2   : > { %585 = vmatprep.subr.mxu0 %v512_v23 }
  0xe3   : > { %586 = vmatpush1.msra.mxu0 %v511_v24 }
 0x184   : > { %v1223_v55 = vpop.f32.mrf.mxu0 }
 0x185   : > { %495 = vmatmul.mubr.f32.vlgmr.msra.gmra.mxu1 %v1223_v55 }
 0x186   : > { %v812_v56 = vpop.f32.mrf.mxu0 }
 0x245   : > { %v496_v29 = vpop.f32.mrf.mxu1 }
 0x246   : > { %v497_v37 = vadd.f32 %v496_v29, %v423_v36 }
 0x247   : > { %v498_v30 = vpop.f32.mrf.mxu1 }
 0x248   : > { %v499_v31 = vadd.f32 %v498_v30, %v427_v28  ;;  %v501_v38 = vmax.f32 %v497_v37, 0.0 }
 0x24a   : > { %v755_v32 = vmul.f32 -1.442695, %v499_v31  ;;  %v508_v39 = vsub.f32 %v501_v38, %v1223_v55 }
 0x24c   : > { %892 = vpow2.f32 %v755_v32 }
 0x259   : > { %v893_v34 = vpop.eup %892 }
 0x25a   : > { %v505_v35 = vadd.f32 1.0, %v893_v34 }
 0x25c   : > { %894 = vrcp.f32 %v505_v35 }
 0x269   : > { %v895_v40 = vpop.eup %894 }
 0x26a   : > { %v509_v41 = vmul.f32 %v895_v40, %v508_v39 }
 0x26c   : > { %v510_v42 = vadd.f32 %v509_v41, %v1223_v55 }
 0x26e   : > { %620 = vmatmul.mubr.f32.vlgmr.msra.gmra.mxu0 %v510_v42 }
 0x32e   : > { %v621_v45 = vpop.f32.mrf.mxu0 }
 0x32f   : > { %v622_v52 = vadd.f32 %v621_v45, %v548_v51 }
 0x330   : > { %v623_v46 = vpop.f32.mrf.mxu0 }
 0x331   : > { %v624_v47 = vadd.f32 %v623_v46, %v552_v44  ;;  %v626_v53 = vmax.f32 %v622_v52, 0.0 }
 0x333   : > { %v756_v48 = vmul.f32 -1.442695, %v624_v47  ;;  %v633_v54 = vsub.f32 %v626_v53, %v510_v42 }
 0x335   : > { %896 = vpow2.f32 %v756_v48 }
 0x342   : > { %v897_v49 = vpop.eup %896 }
 0x343   : > { %v630_v50 = vadd.f32 1.0, %v897_v49 }
 0x345   : > { %898 = vrcp.f32 %v630_v50 }
 0x352   : > { %v899_v55 = vpop.eup %898 }
 0x353   : > { %v634_v56 = vmul.f32 %v899_v55, %v633_v54 }
 0x355   : > { %v635_v57 = vadd.f32 %v634_v56, %v510_v42 }
 0x357   : > { %636 = vst [vmem:[%s286_s15] sm:$0xff] %v635_v57 }
 0x358   : > { %991 = shalt.err (!%p988_p0)
}
 0x359   : > { %s992_s26 = scalar_lea.hbm %s649_s12, 128  ;;  %s996_s10 = scalar_lea.hbm %s1275_s6, 256 }
 0x35a   : > { %p993_p1 = scmp.ne.s32.totalorder %s649_s12, %s992_s26  ;;  %p997_p4 = scmp.lt.s32.totalorder %s649_s12, %s1275_s6 }
 0x35b   : > { %p998_p13 = scmp.lt.s32.totalorder %s996_s10, %s992_s26 }
 0x35c   : > { %p994_p2 = pnand %p993_p1, %p1133_p5 }
 0x35d   : > { %p999_p9 = por %p998_p13, %p997_p4 }
 0x35e   : > { %p995_p3 = pneg %p994_p2 }
 0x360   : > { %p1000_p10 = pnand %p999_p9, %p995_p3 }
 0x362   : > { %1003 = shalt.err (!%p1000_p10)
}
 0x363   : > { %825 = dma.vmem_to_hbm [thread:$0]  (%p1133_p5), %s652_s14, 128, %s649_s12, %s638_s16  }
 0x364 PF: > { %p847_p12 = scmp.ge.s32.totalorder %s1046_s24, 2  ;;  %s663_s15 = sand.u32 1, %s1034_s21  }
 0x365   : > { %s664_s18 = scalar_lea.sflag [#allocation4], %s663_s15 }
 0x366   : > { %p838_p7 = pnand %p847_p12, %p1137_p6 }
 0x368   : > { %p839_p8 = pneg %p838_p7 }
 0x36a   : > { %1029 = dma.done.wait (%p839_p8), %s664_s18, 128  }
 0x36b   : > { %1031 = vsyncadd (%p839_p8), %s664_s18, 4294967168  ;;  %p18_p11 = scmp.ge.s32.totalorder %s1120_s27, 4   ;;  %s1280_s21 = smov %s1038_s22 }
 0x36c   : > { %s1281_s22 = smov %s1042_s23  ;;  %s1282_s23 = smov %s1131_s30 }
 0x36d   : > { %s1283_s24 = smov %s1120_s27  ;;  %20 = sbr.rel (!%p18_p11) target bundleno = 5 (0x5), region = 92 }
 0x372   :  { %669 = vsyncpa [#allocation3], 1 }
 0x373   :  { %671 = vsyncpa [#allocation3 + $0x1], 1 }
 0x374   :  { %672 = vsyncpa [#allocation6], 1 }
 0x375   :  { %673 = vsyncpa [#allocation4], 1 }
 0x376   :  { %675 = vsyncpa [#allocation4 + $0x1], 1 }

</bundles_post_ra>
